<compile_context>
chip_gen: v7x
topology: tpu7x:2x2x1
jax: 0.10.0
libtpu: 0.0.40
codegen_flags: <defaults>
</compile_context>

<pallas_src>
import functools

import jax
import jax.numpy as jnp
from jax.experimental import pallas as pl
from jax.experimental.pallas import tpu as pltpu

_LANE = 128                           # TPU lane width
_FUSED_MAX_ELEMS = 2 * 1024 * 1024    # <= 8 MiB f32-equivalent -> fused path
_SUM_TILE_ELEMS = 2 * 1024 * 1024     # 8 MiB f32 tiles for the sum pass
_SUB_TILE_ELEMS = 1024 * 1024         # 4 MiB f32 tiles for the subtract pass
_SUM_CORES = 2                        # pass-1 grid split (v7x megacore)
_VMEM_LIMIT = 48 * 1024 * 1024        # safe on v7x (64 MiB) and v5e/v6e (128)


def _ceil_to(a: int, m: int) -> int:
    return ((a + m - 1) // m) * m


def _fused_kernel(x_ref, o_ref, *, inv_n):
    """Single-block fast path: global mean + subtract in one pass (2N bytes)."""
    xf = x_ref[...].astype(jnp.float32)          # hoisted cast, reused twice
    mean = jnp.sum(xf) * inv_n                   # padded zeros don't perturb
    o_ref[...] = (xf - mean).astype(o_ref.dtype)


def _sum_kernel(x_ref, part_ref, acc_ref, *, tiles_per_core, tile_rows,
                total_rows):
    """Pass 1: per-core partial sums over (tile_rows, LANES) tiles."""
    c = pl.program_id(0)
    i = pl.program_id(1)

    @pl.when(i == 0)
    def _():
        acc_ref[...] = jnp.zeros_like(acc_ref)

    # Rows at/after `valid` belong to a ragged edge block or a clamped
    # duplicate block: their contents are unspecified -> mask them to zero.
    tile_idx = c * tiles_per_core + i
    valid = total_rows - tile_idx * tile_rows
    row_ids = jax.lax.broadcasted_iota(jnp.int32, (tile_rows, 1), 0)
    xf = x_ref[...].astype(jnp.float32)
    xf = jnp.where(row_ids < valid, xf, 0.0)

    # Column-wise accumulation: VPU adds + sublane reduce, no per-tile
    # cross-lane work and no tiny masked stores.
    acc_ref[...] += jnp.sum(xf, axis=0, keepdims=True)

    # One cross-lane reduce per core, on its last tile.
    @pl.when(i == tiles_per_core - 1)
    def _():
        part_ref[...] = jnp.sum(acc_ref[...], keepdims=True)[None]


def _sub_kernel(part_ref, x_ref, o_ref, *, inv_n, num_parts):
    """Pass 2: subtract the global mean (per-core partials combined in SMEM)."""
    total = part_ref[0, 0]
    for p in range(1, num_parts):
        total = total + part_ref[p, 0]
    mean = total * inv_n
    o_ref[...] = (x_ref[...].astype(jnp.float32) - mean).astype(o_ref.dtype)


@jax.jit
def centered_layer(x):
    """X - X.mean() over all elements, preserving shape and dtype."""
    orig_shape = x.shape
    n = x.size
    inv_n = 1.0 / float(n)

    # ---- lane-dense 2-D slab layout (no padding when numel % 128 == 0) ----
    padded_n = _ceil_to(n, _LANE)
    if padded_n % 512 == 0:
        lanes = 512
    elif padded_n % 256 == 0:
        lanes = 256
    else:
        lanes = 128
    rows = padded_n // lanes
    pad = padded_n - n

    x_flat = x.reshape(-1)
    if pad:
        # Rare fallback: numel not a multiple of 128 (pads < 128 zeros; zeros
        # don't perturb the sum and inv_n uses the true element count).
        x_flat = jnp.pad(x_flat, (0, pad))
    x2d = x_flat.reshape(rows, lanes)

    if n <= _FUSED_MAX_ELEMS:
        # ---- fused single-block fast path (<= 8 MiB f32-equivalent) ----
        out2d = pl.pallas_call(
            functools.partial(_fused_kernel, inv_n=inv_n),
            out_shape=jax.ShapeDtypeStruct((rows, lanes), x.dtype),
            in_specs=[pl.BlockSpec((rows, lanes), lambda: (0, 0))],
            out_specs=pl.BlockSpec((rows, lanes), lambda: (0, 0)),
            compiler_params=pltpu.CompilerParams(vmem_limit_bytes=_VMEM_LIMIT),
        )(x2d)
    else:
        # ---- pass 1: tiled global sum, split across 2 cores (v7x) ----
        sum_rows = _SUM_TILE_ELEMS // lanes          # multiple of 8
        num_sum_tiles = pl.cdiv(rows, sum_rows)
        tpc = pl.cdiv(num_sum_tiles, _SUM_CORES)
        partials = pl.pallas_call(
            functools.partial(_sum_kernel, tiles_per_core=tpc,
                              tile_rows=sum_rows, total_rows=rows),
            out_shape=jax.ShapeDtypeStruct((_SUM_CORES, 1, 1), jnp.float32),
            grid=(_SUM_CORES, tpc),
            in_specs=[pl.BlockSpec(
                (sum_rows, lanes),
                # Clamp so every DMA stays in bounds; clamped duplicate tiles
                # are masked to zero in the kernel via the unclamped index.
                lambda c, i: (jnp.minimum(c * tpc + i, num_sum_tiles - 1), 0))],
            out_specs=pl.BlockSpec((1, 1, 1), lambda c, i: (c, 0, 0)),
            scratch_shapes=[pltpu.VMEM((1, lanes), jnp.float32)],
            compiler_params=pltpu.CompilerParams(
                dimension_semantics=("parallel", "arbitrary"),
                vmem_limit_bytes=_VMEM_LIMIT),
        )(x2d)
        partials2d = partials.reshape(_SUM_CORES, 1)   # metadata-only bitcast

        # ---- pass 2: tiled subtract, parallel across cores ----
        sub_rows = _SUB_TILE_ELEMS // lanes
        num_sub_tiles = pl.cdiv(rows, sub_rows)
        out2d = pl.pallas_call(
            functools.partial(_sub_kernel, inv_n=inv_n, num_parts=_SUM_CORES),
            out_shape=jax.ShapeDtypeStruct((rows, lanes), x.dtype),
            grid=(num_sub_tiles,),
            in_specs=[pl.BlockSpec(memory_space=pltpu.MemorySpace.SMEM),
                      pl.BlockSpec((sub_rows, lanes), lambda i: (i, 0))],
            out_specs=pl.BlockSpec((sub_rows, lanes), lambda i: (i, 0)),
            compiler_params=pltpu.CompilerParams(
                dimension_semantics=("parallel",),
                vmem_limit_bytes=_VMEM_LIMIT),
        )(partials2d, x2d)

    out_flat = out2d.reshape(-1)
    if pad:
        out_flat = out_flat[:n]
    return out_flat.reshape(orig_shape)


if __name__ == "__main__":
    key = jax.random.PRNGKey(0)
    k1, k2, k3 = jax.random.split(key, 3)

    # Small NCHW input consistent with the module (fused single-pass path).
    x = jax.random.normal(k1, (2, 4, 16, 16), dtype=jnp.float32)
    y = jax.block_until_ready(centered_layer(x))
    y_ref = x - jnp.mean(x)
    assert y.shape == x.shape and y.dtype == x.dtype
    assert jnp.allclose(y, y_ref, atol=1e-5, rtol=1e-5)
    assert abs(float(jnp.mean(y))) < 1e-5

    # Ragged element count (not a multiple of 128): padded fallback, fused.
    x_odd = jax.random.normal(k2, (3, 5, 7, 11), dtype=jnp.float32)
    y_odd = jax.block_until_ready(centered_layer(x_odd))
    assert y_odd.shape == x_odd.shape and y_odd.dtype == x_odd.dtype
    assert jnp.allclose(y_odd, x_odd - jnp.mean(x_odd), atol=1e-5, rtol=1e-5)

    # Larger input: two-pass tiled path with ragged row tiles (masked sum,
    # clipped partial output blocks) and the 2-way pass-1 grid split.
    x_big = jax.random.normal(k3, (8, 16, 128, 129), dtype=jnp.float32)
    y_big = jax.block_until_ready(centered_layer(x_big))
    y_big_ref = x_big - jnp.mean(x_big)
    assert y_big.shape == x_big.shape and y_big.dtype == x_big.dtype
    assert jnp.allclose(y_big, y_big_ref, atol=1e-5, rtol=1e-5)
    assert abs(float(jnp.mean(y_big))) < 1e-5

    print("KERNEL_OK")
</pallas_src>

<mosaic_0001>
module attributes {stable_mosaic.version = 11 : i64} {
  func.func @_fused_kernel(%arg0: memref<4x512xf32, #tpu.memory_space<vmem>>, %arg1: memref<4x512xf32, #tpu.memory_space<vmem>>) attributes {dimension_semantics = [], scalar_prefetch = 0 : i64, scratch_operands = 0 : i64, tpu.core_type = #tpu.core_type<tc>} {
    %c0 = arith.constant 0 : index
    %c0_0 = arith.constant 0 : index
    %0 = vector.load %arg0[%c0, %c0_0] : memref<4x512xf32, #tpu.memory_space<vmem>>, vector<4x512xf32>
    %1 = vector.shape_cast %0 : vector<4x512xf32> to vector<1x4x512xf32>
    %cst = arith.constant dense<0.000000e+00> : vector<1xf32>
    %2 = vector.multi_reduction <add>, %1, %cst [1, 2] : vector<1x4x512xf32> to vector<1xf32>
    %3 = vector.shape_cast %2 : vector<1xf32> to vector<1x1x1xf32>
    %4 = vector.extract %3[0, 0, 0] : f32 from vector<1x1x1xf32>
    %cst_1 = arith.constant 4.8828125E-4 : f32
    %5 = arith.mulf %4, %cst_1 : f32
    %6 = vector.broadcast %5 : f32 to vector<4x512xf32>
    %7 = arith.subf %0, %6 : vector<4x512xf32>
    %c0_2 = arith.constant 0 : index
    %c0_3 = arith.constant 0 : index
    %8 = vector.load %arg1[%c0_2, %c0_3] : memref<4x512xf32, #tpu.memory_space<vmem>>, vector<4x512xf32>
    tpu.vector_store %arg1[%c0_2, %c0_3], %7 {strides = array<i32>} : memref<4x512xf32, #tpu.memory_space<vmem>>, vector<4x512xf32>,
    return
  }
}

</mosaic_0001>

<bundles_post_ra>
// kernel: centered_layer.1
= control target key start
LH: loop header
LB: loop body
LE: loop exit
PB: predicated region body
PF: predicated region fallthrough
CT: control target
= control target key end

     0   :  { %vm16_vm0 = vcmask 1043456   ;;  %s69_s0 = inlined_call_operand.vmem [shape: f32[4,512], index: 0, kind: input, shape index: {}]   ;;  %s70_s1 = inlined_call_operand.vmem [shape: f32[4,512], index: 1, kind: output, shape index: {}]  }
   0x1   :  { %v8_v0 = vld [vmem:[%s69_s0] sm:$0xff]  ;;  %v9_v1 = vld [vmem:[%s69_s0 + $0x8] sm:$0xff] }
   0x2   :  { %v12_v2 = vcombine.high %v8_v0, %v8_v0  ;;  %v13_v3 = vcombine.high %v9_v1, %v9_v1  ;;  %v17_v4 = vsel %vm16_vm0, %v8_v0, 0.0  ;;  %v20_v6 = vsel %vm16_vm0, %v9_v1, 0.0 }
   0x4   :  { %v18_v5 = vsel %vm16_vm0, %v12_v2, 0.0  ;;  %v22_v8 = vsel %vm16_vm0, %v13_v3, 0.0 }
   0x5   :  { %v19_v7 = vadd.f32 %v18_v5, %v17_v4 }
   0x7   :  { %v21_v9 = vadd.f32 %v20_v6, %v19_v7 }
   0x9   :  { %v23_v10 = vadd.f32 %v22_v8, %v21_v9 }
   0xb   :  { %24 = vadd.xlane.f32.xlu0 %v23_v10 }
  0x98   :  { %v25_v11 = vpop.xlane.xlu0 %24 }
  0x99   :  { %v26_v12 = vrot.slane %v25_v11, 4 }
  0x9b   :  { %v27_v13 = vadd.f32 %v26_v12, %v25_v11 }
  0x9d   :  { %v28_v14 = vrot.slane %v27_v13, 2 }
  0x9f   :  { %v29_v15 = vadd.f32 %v28_v14, %v27_v13 }
  0xa1   :  { %v30_v16 = vrot.slane %v29_v15, 1 }
  0xa3   :  { %v31_v17 = vadd.f32 %v30_v16, %v29_v15 }
  0xa5   :  { %43 = vpush %v31_v17 }
  0xd6   :  { %s44_s10 = spop %43 }
  0xd7   :  { %s33_s0 = smul.f32 0.00048828125, %s44_s10 }
  0xd9   :  { %v34_v18 = vstv %s33_s0 }
  0xda   :  { %v35_v19 = vsub.f32 %v8_v0, %v34_v18  ;;  %v36_v20 = vsub.f32 %v9_v1, %v34_v18 }
  0xdc   :  { %37 = vst [vmem:[%s70_s1] sm:$0xff] %v35_v19  ;;  %38 = vst [vmem:[%s70_s1 + $0x8] sm:$0xff] %v36_v20 }

</bundles_post_ra>
